<compile_context>
chip_gen: v6e
topology: v6e:2x2x1
jax: 0.10.0
libtpu: 0.0.40
codegen_flags: <defaults>
</compile_context>

<pallas_src>
import functools

import jax
import jax.numpy as jnp
import numpy as np
from jax import lax
from jax.experimental import pallas as pl
from jax.experimental.pallas import tpu as pltpu

_LANE = 128
_SUB = 8
_UNROLL_C = 32      # below this class count, gather via chained 2-D selects


def _gather_pt_alpha(logit_ref, tgt32, alpha_ref):
    """Return (pt_raw, alpha_c), both (S, 128); pt_raw in the logits dtype."""
    c = logit_ref.shape[0]
    if c <= _UNROLL_C:
        # Chained per-class selects on 2-D (S, 128) slabs: ~3 VPU ops/class,
        # no (C, S, 128) temporaries, no f32 one-hot, no extra multiplies.
        pt = jnp.zeros(tgt32.shape, logit_ref.dtype)
        al = jnp.zeros(tgt32.shape, jnp.float32)
        for ci in range(c):
            sel = tgt32 == ci
            pt = jnp.where(sel, logit_ref[ci], pt)
            al = jnp.where(sel, alpha_ref[ci], al)
        return pt, al
    # Large C: bool one-hot mask + select + class-axis reduce (vectorized).
    # TODO(synk): block the class axis (extra reduction grid dim) for very
    # large num_class so v7x's 64 MiB VMEM keeps a wide spatial tile.
    logits = logit_ref[...]                                    # (C, S, 128)
    alpha = alpha_ref[...]                                     # (C, 1, 128)
    cls_ids = lax.broadcasted_iota(jnp.int32, logits.shape, 0)
    onehot = cls_ids == tgt32[None, :, :]                      # bool mask
    pt = jnp.sum(jnp.where(onehot, logits, 0), axis=0)
    al = jnp.sum(jnp.where(onehot, alpha, 0.0), axis=0)
    return pt, al


def _focal_kernel(logit_ref, tgt_ref, alpha_ref, out_ref, acc_ref, *,
                  gamma, eps, hw_valid, n_inner, blk_positions, full_blocks,
                  need_mask):
    o = pl.program_id(1)
    i = pl.program_id(2)

    @pl.when(i == 0)
    def _():
        acc_ref[...] = jnp.zeros_like(acc_ref)

    tgt32 = tgt_ref[...].astype(jnp.int32)                     # (S, 128)
    pt_raw, alpha_c = _gather_pt_alpha(logit_ref, tgt32, alpha_ref)
    pt = pt_raw.astype(jnp.float32) + eps                      # (S, 128)

    logpt = alpha_c * jnp.log(pt)
    one_minus_pt = 1.0 - pt
    g = float(gamma)
    if g.is_integer():
        # integer gamma stays on the VPU (no exp/log on the single EUP slot)
        focal = lax.integer_pow(one_minus_pt, int(g))
    else:
        # matches torch semantics (including its NaN hazard when pt + eps > 1)
        focal = jnp.power(one_minus_pt, g)
    loss = -(focal * logpt)                                    # (S, 128) f32

    blk = o * n_inner + i      # logical spatial block (unclamped)
    if need_mask:
        # Only ragged / revisited blocks pay for the position mask; it is a
        # SELECT (not a multiply) applied before accumulation so NaN/Inf from
        # garbage lanes of a partial tile can never leak in.
        @pl.when(blk < full_blocks)
        def _():
            acc_ref[...] += loss

        @pl.when(blk >= full_blocks)
        def _():
            row = lax.broadcasted_iota(jnp.int32, loss.shape, 0)
            lane = lax.broadcasted_iota(jnp.int32, loss.shape, 1)
            pos = blk * blk_positions + row * _LANE + lane
            acc_ref[...] += jnp.where(pos < hw_valid, loss, 0.0)
    else:
        acc_ref[...] += loss

    @pl.when(i == pl.num_programs(2) - 1)
    def _():
        total = jnp.sum(acc_ref[...])
        lane128 = lax.broadcasted_iota(jnp.int32, (1, _LANE), 1)
        out_ref[...] = jnp.where(lane128 == 0, total, 0.0)


def _vmem_budget():
    """Per-generation VMEM budget for block sizing and the scoped limit we
    request from Mosaic (v5e/v6e: 128 MiB physical; v7x: 64 MiB per TC)."""
    cap = 64 << 20                    # conservative default (v7x per-TC VMEM)
    try:
        info = pltpu.get_tpu_info()
        cap = int(getattr(info, "vmem_capacity_bytes", cap))
    except Exception:
        pass
    budget = max(8 << 20, min(20 << 20, cap // 3))
    limit = min(cap // 2, budget + (12 << 20))
    limit = max(limit, budget + (4 << 20))
    return int(budget), int(limit)


def _sublane_tile(r, c, in_bytes, tgt_bytes, budget, single_batch):
    """Sublane rows (of 128 lanes each) per spatial block.

    Sized so the double-buffered logits / target tiles, the f32 accumulator
    and the kernel's per-class temporaries fit `budget`.  Kept a multiple of
    16 so both f32 (8,128) and packed bf16 (16,128) sublane tiles are exact
    (no hidden 2x padding for sub-32-bit dtypes)."""
    per_row = _LANE * (2 * c * in_bytes          # double-buffered logits rows
                       + 2 * max(tgt_bytes, 4)   # double-buffered target rows
                       + 4                       # f32 accumulator row
                       + 16 * c + 64)            # in-kernel temporaries
    s = int(budget // per_row)
    s = max(_SUB, min(s, 1024))
    if single_batch and r > _SUB:
        # batch 1: leave (at least) two roughly equal spatial blocks so the
        # second TensorCore on v7x megacore parts gets work.
        gran = 16 if r > 16 else _SUB
        half = -(-((r + 1) // 2) // gran) * gran
        s = min(s, half)
    if s >= r:
        return int(r)
    if s >= 16:
        s = (s // 16) * 16
    return int(max(_SUB, min(s, r)))


def _build_alpha(alpha, num_class, balance_index=-1):
    """Mirror FocalLoss_Ori.__init__ alpha handling."""
    if isinstance(alpha, (list, tuple)):
        assert len(alpha) == num_class
        return jnp.asarray(alpha, jnp.float32)
    if isinstance(alpha, (float, int)) and not isinstance(alpha, bool):
        assert 0 < alpha < 1.0, 'alpha should be in `(0,1)`)'
        assert balance_index > -1
        vec = jnp.full((num_class,), 1.0 - alpha, jnp.float32)
        return vec.at[balance_index].set(alpha)
    return jnp.asarray(alpha, jnp.float32)


def focal_loss_pallas(logit, target, alpha, gamma=2, size_average=True,
                      eps=1e-6):
    """Pallas implementation of FocalLoss_Ori.forward.

    logit: (N, C, *spatial) softmax scores (or degenerate (M, C));
    target: integer labels with N*prod(spatial) (or M) elements;
    alpha: per-class weights of length C.
    """
    logit = jnp.asarray(logit)
    target = jnp.asarray(target)
    if not jnp.issubdtype(target.dtype, jnp.integer):
        target = target.astype(jnp.int32)

    if logit.ndim > 2:
        n, c = int(logit.shape[0]), int(logit.shape[1])
        hw = int(np.prod(logit.shape[2:]))
        logit3 = logit.reshape(n, c, hw)                 # free, NCHW-native
    else:
        # degenerate (M, C) path: one transpose puts samples on the lane axis
        m_rows, c = int(logit.shape[0]), int(logit.shape[1])
        n, hw = 1, m_rows
        logit3 = logit.T.reshape(1, c, hw)
    tgt2 = target.reshape(n, hw)                         # native int dtype
    alpha_lane = jnp.broadcast_to(
        jnp.asarray(alpha, jnp.float32).reshape(c, 1, 1), (c, 1, _LANE))
    m_total = n * hw

    # Pack spatial onto (sublane, lane): hw -> (R, 128).  Pure metadata when
    # hw is lane aligned; otherwise pad (one extra copy, rare fallback).
    hw_pad = int(pl.cdiv(hw, _LANE)) * _LANE
    if hw_pad != hw:
        logit3 = jnp.pad(logit3, ((0, 0), (0, 0), (0, hw_pad - hw)))
        tgt2 = jnp.pad(tgt2, ((0, 0), (0, hw_pad - hw)))
    r = hw_pad // _LANE
    logit4 = logit3.reshape(n, c, r, _LANE)
    tgt3 = tgt2.reshape(n, r, _LANE)

    budget, vmem_limit = _vmem_budget()
    s_blk = _sublane_tile(r, c, logit4.dtype.itemsize, tgt3.dtype.itemsize,
                          budget, single_batch=(n == 1))
    n_blk = int(pl.cdiv(r, s_blk))
    if n == 1 and n_blk > 1 and n_blk % 2 == 1:
        # make the block count even so the 2-way megacore split never has to
        # re-stream a whole block
        s_try = -(-int(pl.cdiv(r, n_blk + 1)) // 16) * 16
        s_try = max(_SUB, min(s_try, s_blk))
        if s_try != s_blk:
            s_blk = s_try
            n_blk = int(pl.cdiv(r, s_blk))

    # v7x megacore: split the spatial blocks across a second "parallel" grid
    # axis when batch alone cannot feed both TensorCores.  The clamped
    # index_map may revisit the last block; the position mask zeroes it.
    n_outer = 2 if (n == 1 and n_blk >= 2) else 1
    n_inner = int(pl.cdiv(n_blk, n_outer))

    blk_positions = s_blk * _LANE
    full_blocks = hw // blk_positions              # fully-valid logical blocks
    need_mask = full_blocks < n_outer * n_inner

    def _blk(o, i):
        return jnp.minimum(o * n_inner + i, n_blk - 1)

    kernel = functools.partial(
        _focal_kernel, gamma=gamma, eps=eps, hw_valid=hw, n_inner=n_inner,
        blk_positions=blk_positions, full_blocks=full_blocks,
        need_mask=need_mask)

    partials = pl.pallas_call(
        kernel,
        out_shape=jax.ShapeDtypeStruct((n, n_outer, 1, _LANE), jnp.float32),
        grid_spec=pltpu.PrefetchScalarGridSpec(
            num_scalar_prefetch=0,
            grid=(n, n_outer, n_inner),
            in_specs=[
                # logits tile (C, S, 128): classes leading, spatial dense
                pl.BlockSpec((None, c, s_blk, _LANE),
                             lambda b, o, i: (b, 0, _blk(o, i), 0)),
                # targets tile (S, 128), native integer dtype
                pl.BlockSpec((None, s_blk, _LANE),
                             lambda b, o, i: (b, _blk(o, i), 0)),
                # alpha, resident (C, 1, 128) f32
                pl.BlockSpec((c, 1, _LANE), lambda b, o, i: (0, 0, 0)),
            ],
            # lane-dense (1, 128) partial-sum slab per (batch, outer) block
            out_specs=pl.BlockSpec((None, None, 1, _LANE),
                                   lambda b, o, i: (b, o, 0, 0)),
            scratch_shapes=[pltpu.VMEM((s_blk, _LANE), jnp.float32)],
        ),
        compiler_params=pltpu.CompilerParams(
            dimension_semantics=("parallel", "parallel", "arbitrary"),
            vmem_limit_bytes=vmem_limit),
    )(logit4, tgt3, alpha_lane)

    total = jnp.sum(partials)                      # tiny host-side reduction
    return total / m_total if size_average else total


def focal_loss_ref(logit, target, alpha, gamma=2, size_average=True, eps=1e-6):
    """Pure-JAX reference mirroring the torch module."""
    if logit.ndim > 2:
        n, c = logit.shape[0], logit.shape[1]
        logit = logit.reshape(n, c, -1)
        logit = jnp.transpose(logit, (0, 2, 1)).reshape(-1, c)
    target = target.reshape(-1)
    pt = jnp.take_along_axis(logit, target[:, None], axis=1)[:, 0] + eps
    logpt = jnp.asarray(alpha, jnp.float32)[target] * jnp.log(pt)
    loss = -jnp.power(1.0 - pt, gamma) * logpt
    return loss.mean() if size_average else loss.sum()


if __name__ == "__main__":
    key = jax.random.PRNGKey(0)
    keys = jax.random.split(key, 8)

    def _check(logit, target, alpha, gamma=2):
        out = focal_loss_pallas(logit, target, alpha, gamma=gamma,
                                size_average=True)
        out = jax.block_until_ready(out)
        ref = focal_loss_ref(logit, target, alpha, gamma=gamma,
                             size_average=True)
        np.testing.assert_allclose(np.asarray(out), np.asarray(ref),
                                   rtol=2e-5, atol=1e-6)

    alpha2 = _build_alpha([0.25, 0.75], 2)          # module defaults

    # 1) canonical use: num_class=2, NCHW softmax scores
    logit = jax.nn.softmax(
        jax.random.normal(keys[0], (2, 2, 16, 16), jnp.float32), axis=1)
    target = jax.random.randint(keys[1], (2, 16, 16), 0, 2)
    _check(logit, target, alpha2)

    # 2) ragged spatial size (lane padding + select-masked tail)
    logit = jax.nn.softmax(
        jax.random.normal(keys[2], (1, 2, 10, 13), jnp.float32), axis=1)
    target = jax.random.randint(keys[3], (1, 10, 13), 0, 2)
    _check(logit, target, alpha2)

    # 3) batch 1 with multiple row blocks (megacore split + masked last block)
    logit = jax.nn.softmax(
        jax.random.normal(keys[4], (1, 2, 40, 52), jnp.float32), axis=1)
    target = jax.random.randint(keys[5], (1, 40, 52), 0, 2)
    _check(logit, target, alpha2)

    # 4) degenerate (M, C) input with scalar alpha + balance_index
    alpha4 = _build_alpha(0.25, 4, balance_index=1)
    logit = jax.nn.softmax(
        jax.random.normal(keys[6], (40, 4), jnp.float32), axis=1)
    target = jax.random.randint(keys[7], (40,), 0, 4)
    _check(logit, target, alpha4)

    print("KERNEL_OK")
</pallas_src>

<mosaic_0001>
module attributes {stable_mosaic.version = 11 : i64} {
  func.func @_focal_kernel(%arg0: i32, %arg1: i32, %arg2: i32, %arg3: memref<1x2x2x128xf32, #tpu.memory_space<vmem>>, %arg4: memref<1x2x128xi32, #tpu.memory_space<vmem>>, %arg5: memref<2x1x128xf32, #tpu.memory_space<vmem>>, %arg6: memref<1x1x1x128xf32, #tpu.memory_space<vmem>>, %arg7: memref<2x128xf32, #tpu.memory_space<vmem>>) attributes {dimension_semantics = [#tpu.dimension_semantics<parallel>, #tpu.dimension_semantics<parallel>, #tpu.dimension_semantics<arbitrary>], iteration_bounds = array<i64: 2, 1, 1>, scalar_prefetch = 0 : i64, scratch_operands = 1 : i64, tpu.core_type = #tpu.core_type<tc>, window_params = [{transform_indices = @transform_0, window_bounds = array<i64: 1, 2, 2, 128>}, {transform_indices = @transform_1, window_bounds = array<i64: 1, 2, 128>}, {pipeline_mode = #tpu.pipeline_mode<synchronous>, transform_indices = @transform_2, window_bounds = array<i64: 2, 1, 128>}, {transform_indices = @transform_3, window_bounds = array<i64: 1, 1, 1, 128>}]} {
    %c0_i32 = arith.constant 0 : i32
    %0 = arith.cmpi eq, %arg2, %c0_i32 : i32
    %1 = arith.extui %0 : i1 to i32
    %c0_i32_0 = arith.constant 0 : i32
    %2 = arith.cmpi ne, %1, %c0_i32_0 : i32
    scf.if %2 {
      %cst_27 = arith.constant 0.000000e+00 : f32
      %43 = vector.broadcast %cst_27 : f32 to vector<2x128xf32>
      %c0_28 = arith.constant 0 : index
      %c0_29 = arith.constant 0 : index
      %44 = vector.load %arg7[%c0_28, %c0_29] : memref<2x128xf32, #tpu.memory_space<vmem>>, vector<2x128xf32>
      tpu.vector_store %arg7[%c0_28, %c0_29], %43 {strides = array<i32>} : memref<2x128xf32, #tpu.memory_space<vmem>>, vector<2x128xf32>,
    } else {
    }
    %c0 = arith.constant 0 : index
    %c0_1 = arith.constant 0 : index
    %c0_2 = arith.constant 0 : index
    %3 = vector.load %arg4[%c0, %c0_1, %c0_2] : memref<1x2x128xi32, #tpu.memory_space<vmem>>, vector<1x2x128xi32>
    %4 = vector.shape_cast %3 : vector<1x2x128xi32> to vector<2x128xi32>
    %cst = arith.constant 0.000000e+00 : f32
    %5 = vector.broadcast %cst : f32 to vector<2x128xf32>
    %cst_3 = arith.constant 0.000000e+00 : f32
    %6 = vector.broadcast %cst_3 : f32 to vector<2x128xf32>
    %c0_i32_4 = arith.constant 0 : i32
    %7 = vector.broadcast %c0_i32_4 : i32 to vector<2x128xi32>
    %8 = arith.cmpi eq, %4, %7 : vector<2x128xi32>
    %c0_5 = arith.constant 0 : index
    %c0_6 = arith.constant 0 : index
    %c0_7 = arith.constant 0 : index
    %c0_8 = arith.constant 0 : index
    %9 = vector.load %arg3[%c0_5, %c0_6, %c0_7, %c0_8] : memref<1x2x2x128xf32, #tpu.memory_space<vmem>>, vector<1x1x2x128xf32>
    %10 = vector.shape_cast %9 : vector<1x1x2x128xf32> to vector<2x128xf32>
    %11 = arith.select %8, %10, %5 : vector<2x128xi1>, vector<2x128xf32>
    %c0_9 = arith.constant 0 : index
    %c0_10 = arith.constant 0 : index
    %c0_11 = arith.constant 0 : index
    %12 = vector.load %arg5[%c0_9, %c0_10, %c0_11] : memref<2x1x128xf32, #tpu.memory_space<vmem>>, vector<1x1x128xf32>
    %13 = vector.shape_cast %12 : vector<1x1x128xf32> to vector<1x128xf32>
    %14 = vector.shape_cast %13 : vector<1x128xf32> to vector<1x128xf32>
    %15 = vector.broadcast %14 : vector<1x128xf32> to vector<2x128xf32>
    %16 = arith.select %8, %15, %6 : vector<2x128xi1>, vector<2x128xf32>
    %c1_i32 = arith.constant 1 : i32
    %17 = vector.broadcast %c1_i32 : i32 to vector<2x128xi32>
    %18 = arith.cmpi eq, %4, %17 : vector<2x128xi32>
    %c0_12 = arith.constant 0 : index
    %c1 = arith.constant 1 : index
    %c0_13 = arith.constant 0 : index
    %c0_14 = arith.constant 0 : index
    %19 = vector.load %arg3[%c0_12, %c1, %c0_13, %c0_14] : memref<1x2x2x128xf32, #tpu.memory_space<vmem>>, vector<1x1x2x128xf32>
    %20 = vector.shape_cast %19 : vector<1x1x2x128xf32> to vector<2x128xf32>
    %21 = arith.select %18, %20, %11 : vector<2x128xi1>, vector<2x128xf32>
    %c1_15 = arith.constant 1 : index
    %c0_16 = arith.constant 0 : index
    %c0_17 = arith.constant 0 : index
    %22 = vector.load %arg5[%c1_15, %c0_16, %c0_17] : memref<2x1x128xf32, #tpu.memory_space<vmem>>, vector<1x1x128xf32>
    %23 = vector.shape_cast %22 : vector<1x1x128xf32> to vector<1x128xf32>
    %24 = vector.shape_cast %23 : vector<1x128xf32> to vector<1x128xf32>
    %25 = vector.broadcast %24 : vector<1x128xf32> to vector<2x128xf32>
    %26 = arith.select %18, %25, %16 : vector<2x128xi1>, vector<2x128xf32>
    %cst_18 = arith.constant 9.99999997E-7 : f32
    %27 = vector.broadcast %cst_18 : f32 to vector<2x128xf32>
    %28 = arith.addf %21, %27 : vector<2x128xf32>
    %29 = math.log %28 : vector<2x128xf32>
    %30 = arith.mulf %26, %29 : vector<2x128xf32>
    %cst_19 = arith.constant 1.000000e+00 : f32
    %31 = vector.broadcast %cst_19 : f32 to vector<2x128xf32>
    %32 = arith.subf %31, %28 : vector<2x128xf32>
    %33 = arith.mulf %32, %32 : vector<2x128xf32>
    %34 = arith.mulf %33, %30 : vector<2x128xf32>
    %cst_20 = arith.constant 0.000000e+00 : f32
    %35 = vector.broadcast %cst_20 : f32 to vector<2x128xf32>
    %36 = arith.subf %35, %34 : vector<2x128xf32>
    %c0_21 = arith.constant 0 : index
    %c0_22 = arith.constant 0 : index
    %37 = vector.load %arg7[%c0_21, %c0_22] : memref<2x128xf32, #tpu.memory_space<vmem>>, vector<2x128xf32>
    %38 = arith.addf %37, %36 : vector<2x128xf32>
    %c0_23 = arith.constant 0 : index
    %c0_24 = arith.constant 0 : index
    %39 = vector.load %arg7[%c0_23, %c0_24] : memref<2x128xf32, #tpu.memory_space<vmem>>, vector<2x128xf32>
    tpu.vector_store %arg7[%c0_23, %c0_24], %38 {strides = array<i32>} : memref<2x128xf32, #tpu.memory_space<vmem>>, vector<2x128xf32>,
    %c0_i32_25 = arith.constant 0 : i32
    %40 = arith.cmpi eq, %arg2, %c0_i32_25 : i32
    %41 = arith.extui %40 : i1 to i32
    %c0_i32_26 = arith.constant 0 : i32
    %42 = arith.cmpi ne, %41, %c0_i32_26 : i32
    scf.if %42 {
      %c0_27 = arith.constant 0 : index
      %c0_28 = arith.constant 0 : index
      %43 = vector.load %arg7[%c0_27, %c0_28] : memref<2x128xf32, #tpu.memory_space<vmem>>, vector<2x128xf32>
      %44 = vector.shape_cast %43 : vector<2x128xf32> to vector<1x2x128xf32>
      %cst_29 = arith.constant dense<0.000000e+00> : vector<1xf32>
      %45 = vector.multi_reduction <add>, %44, %cst_29 [1, 2] : vector<1x2x128xf32> to vector<1xf32>
      %46 = vector.shape_cast %45 : vector<1xf32> to vector<1x1x1xf32>
      %47 = vector.extract %46[0, 0, 0] : f32 from vector<1x1x1xf32>
      %48 = tpu.iota {dimensions = array<i32: 1>} : vector<1x128xi32>
      %c0_i32_30 = arith.constant 0 : i32
      %49 = vector.broadcast %c0_i32_30 : i32 to vector<1x128xi32>
      %50 = arith.cmpi eq, %48, %49 : vector<1x128xi32>
      %cst_31 = arith.constant 0.000000e+00 : f32
      %51 = vector.broadcast %47 : f32 to vector<1x128xf32>
      %52 = vector.broadcast %cst_31 : f32 to vector<1x128xf32>
      %53 = arith.select %50, %51, %52 : vector<1x128xi1>, vector<1x128xf32>
      %c0_32 = arith.constant 0 : index
      %c0_33 = arith.constant 0 : index
      %c0_34 = arith.constant 0 : index
      %c0_35 = arith.constant 0 : index
      %54 = vector.load %arg6[%c0_32, %c0_33, %c0_34, %c0_35] : memref<1x1x1x128xf32, #tpu.memory_space<vmem>>, vector<1x1x1x128xf32>
      %55 = vector.shape_cast %54 : vector<1x1x1x128xf32> to vector<1x128xf32>
      %56 = vector.shape_cast %53 : vector<1x128xf32> to vector<1x1x1x128xf32>
      tpu.vector_store %arg6[%c0_32, %c0_33, %c0_34, %c0_35], %56 {strides = array<i32>} : memref<1x1x1x128xf32, #tpu.memory_space<vmem>>, vector<1x1x1x128xf32>,
    } else {
    }
    return
  }
  func.func @transform_0(%arg0: i32, %arg1: i32, %arg2: i32) -> (i32, i32, i32, i32) {
    %c1_i32 = arith.constant 1 : i32
    %0 = arith.muli %arg1, %c1_i32 : i32
    %1 = arith.addi %0, %arg2 : i32
    %c0_i32 = arith.constant 0 : i32
    %2 = arith.minsi %1, %c0_i32 : i32
    %c0_i32_0 = arith.constant 0 : i32
    %c0_i32_1 = arith.constant 0 : i32
    %c0_i32_2 = arith.constant 0 : i32
    return %arg0, %c0_i32_0, %2, %c0_i32_1 : i32, i32, i32, i32
  }
  func.func @transform_1(%arg0: i32, %arg1: i32, %arg2: i32) -> (i32, i32, i32) {
    %c1_i32 = arith.constant 1 : i32
    %0 = arith.muli %arg1, %c1_i32 : i32
    %1 = arith.addi %0, %arg2 : i32
    %c0_i32 = arith.constant 0 : i32
    %2 = arith.minsi %1, %c0_i32 : i32
    %c0_i32_0 = arith.constant 0 : i32
    %c0_i32_1 = arith.constant 0 : i32
    return %arg0, %2, %c0_i32_0 : i32, i32, i32
  }
  func.func @transform_2(%arg0: i32, %arg1: i32, %arg2: i32) -> (i32, i32, i32) {
    %c0_i32 = arith.constant 0 : i32
    %c0_i32_0 = arith.constant 0 : i32
    %c0_i32_1 = arith.constant 0 : i32
    %c0_i32_2 = arith.constant 0 : i32
    return %c0_i32, %c0_i32_0, %c0_i32_1 : i32, i32, i32
  }
  func.func @transform_3(%arg0: i32, %arg1: i32, %arg2: i32) -> (i32, i32, i32, i32) {
    %c0_i32 = arith.constant 0 : i32
    %c0_i32_0 = arith.constant 0 : i32
    %c0_i32_1 = arith.constant 0 : i32
    return %arg0, %arg1, %c0_i32, %c0_i32_0 : i32, i32, i32, i32
  }
}

</mosaic_0001>

<bundles_post_ra>
// kernel: tpu_custom_call.1
= control target key start
LH: loop header
LB: loop body
LE: loop exit
PB: predicated region body
PF: predicated region fallthrough
CT: control target
= control target key end

     0   :  { %s893_s0 = inlined_call_operand.hbm [shape: f32[2,2,2,128], index: 0, kind: input, shape index: {}]   ;;  %s894_s1 = inlined_call_operand.hbm [shape: s32[2,2,128], index: 1, kind: input, shape index: {}]   ;;  %s895_s2 = inlined_call_operand.vmem [shape: f32[2,1,128], index: 2, kind: input, shape index: {}]   ;;  %s896_s3 = inlined_call_operand.hbm [shape: f32[2,1,1,128], index: 3, kind: output, shape index: {}]  }
   0x1   :  { %897 = sst [smem:[#allocation12_spill]] %s893_s0 }
   0x2   :  { %8 = vsyncpa [#allocation4], 0 }
   0x3   :  { %10 = vsyncpa [#allocation4 + $0x1], 0 }
   0x4   :  { %11 = vsyncpa [#allocation7], 0 }
   0x5   :  { %13 = vsyncpa [#allocation7 + $0x1], 0 }
   0x6   :  { %14 = vsyncpa [#allocation5], 0 }
   0x7   :  { %16 = vsyncpa [#allocation5 + $0x1], 0  ;;  %s718_s12 = smov 0   ;;  %s720_s13 = smov 0  }
   0x8   :  { %s722_s14 = smov 0   ;;  %s724_s15 = smov 0  }
   0x9   :  { %s726_s16 = smov 0   ;;  %s728_s17 = smov 0  }
   0xa LB: > { %s456_s18 = sadd.s32 4294967295, %s690_s17   ;;  %s457_s19 = sadd.s32 4294967294, %s690_s17   ;;  %s690_s17 = sphi %s728_s17, %s22_s17   ;;  %s686_s16 = sphi %s726_s16, %s909_s16   ;;  %s682_s15 = sphi %s724_s15, %s908_s15   ;;  %s678_s14 = sphi %s722_s14, %s907_s14   ;;  %s674_s13 = sphi %s720_s13, %s906_s13   ;;  %s670_s12 = sphi %s718_s12, %s905_s12  }
   0xb   : > { %s41_s20 = sadd.s32 1, %s686_s16  ;;  %s56_s21 = sadd.s32 1, %s678_s14 }
   0xc   : > { %p43_p0 = scmp.ge.s32.totalorder %s41_s20, 2  ;;  %p63_p1 = scmp.ne.s32.totalorder %s678_s14, %s674_s13 }
   0xd   : > { %p64_p2 = scmp.eq.s32.totalorder %s690_s17, 0  ;;  %p69_p3 = scmp.ne.s32.totalorder %s674_s13, %s670_s12 }
   0xe   : > { %s911_s20 = smov (%p43_p0, %s41_s20), 0  ;;  %p70_p5 = scmp.eq.s32.totalorder %s456_s18, 0 }
   0xf   : > { %p759_p4 = por %p64_p2, %p63_p1  ;;  %s51_s23 = ssub.s32 %s686_s16, %s911_s20 }
  0x10   : > { %p150_p6 = scmp.eq.s32.totalorder %s456_s18, 1  ;;  %p54_p7 = scmp.eq.s32.totalorder %s51_s23, 0 }
  0x11   : > { %p765_p8 = por %p70_p5, %p69_p3  ;;  %p156_p10 = scmp.eq.s32.totalorder %s457_s19, 1 }
  0x12   : > { %p769_p9 = por %p150_p6, %p63_p1  ;;  %p459_p12 = scmp.ge.s32.totalorder %s690_s17, 2 }
  0x13   : > { %s774_s26 = scalar_select %p54_p7, %s678_s14, %s56_s21  }
  0x14   : > { %p776_p11 = por %p156_p10, %p69_p3  ;;  %p495_p13 = scmp.lt.s32.totalorder %s690_s17, 2 }
  0x15   : > { %s783_s28 = sand.u32 1, %s678_s14   ;;  %s475_s30 = sshll.u32 %s686_s16, 6 }
  0x16   : > { %s460_s29 = sshll.u32 %s783_s28, 2  ;;  %s902_s0 = sld [smem:[#allocation12_spill]] }
  0x17   : > { %s183_s7 = scalar_lea.vmem [#allocation3], %s460_s29  ;;  %p792_p0 = pnand %p495_p13, %p759_p4 }
  0x18   : > { %s194_s8 = sshll.u32 %s183_s7, 4  ;;  %p465_p1 = scmp.ge.s32.totalorder %s690_s17, 1  ;;  %s195_s8 = int_to_ptr.vmem [resolvable:$true] %s194_s8 }
  0x19   : > { %s180_s10 = scalar_lea.sflag [#allocation4], %s783_s28  ;;  %p552_p2 = pneg %p792_p0 }
  0x1a   : > { %s563_s11 = scalar_lea.vmem %s195_s8, 64  ;;  %s692_s18 = smov [#allocation3]  }
  0x1b   : > { %p564_p3 = scmp.ne.s32.totalorder %s195_s8, %s563_s11  ;;  %s568_s19 = sshll.u32 %s692_s18, 4  ;;  %s569_s19 = int_to_ptr.vmem [resolvable:$false] %s568_s19 }
  0x1c   : > { %s193_s6 = scalar_lea.hbm %s902_s0, %s475_s30  ;;  %s570_s21 = scalar_lea.vmem %s569_s19, 128 }
  0x1d   : > { %p566_p5 = pnand %p564_p3, %p552_p2  ;;  %p571_p4 = scmp.lt.s32.totalorder %s195_s8, %s569_s19 }
  0x1e   : > { %p572_p7 = scmp.lt.s32.totalorder %s570_s21, %s563_s11 }
  0x1f   : > { %p567_p6 = pneg %p566_p5 }
  0x20   : > { %p573_p10 = por %p572_p7, %p571_p4 }
  0x22   : > { %p574_p13 = pnand %p573_p10, %p567_p6 }
  0x24   : > { %577 = shalt.err (!%p574_p13)
}
  0x25   : > { %s693_s22 = smov 32   ;;  %s694_s23 = smov 2  }
  0x26   : > { %487 = dma.hbm_to_vmem [thread:$0]  (!%p792_p0), %s193_s6, 64, %s195_s8, %s180_s10, %s693_s22, %s693_s22, %s694_s23  }
  0x27   : > { %p224_p3 = scmp.lt.s32.totalorder %s690_s17, 3  ;;  %s463_s29 = sshll.u32 %s783_s28, 1 }
  0x28   : > { %s464_s30 = sshll.u32 %s686_s16, 5  ;;  %s208_s18 = scalar_lea.vmem [#allocation6], %s463_s29 }
  0x29   : > { %p810_p5 = pnand %p465_p1, %p224_p3  ;;  %s217_s11 = scalar_lea.hbm %s894_s1, %s464_s30 }
  0x2a   : > { %s219_s19 = sshll.u32 %s208_s18, 4  ;;  %s205_s21 = scalar_lea.sflag [#allocation7], %s783_s28  ;;  %s220_s19 = int_to_ptr.vmem [resolvable:$true] %s219_s19 }
  0x2b   : > { %s591_s0 = scalar_lea.vmem %s220_s19, 32  ;;  %s695_s6 = smov [#allocation6]  }
  0x2c   : > { %p592_p6 = scmp.ne.s32.totalorder %s220_s19, %s591_s0  ;;  %s596_s8 = sshll.u32 %s695_s6, 4  ;;  %s597_s8 = int_to_ptr.vmem [resolvable:$false] %s596_s8 }
  0x2d   : > { %s598_s10 = scalar_lea.vmem %s597_s8, 64  ;;  %p599_p1 = scmp.lt.s32.totalorder %s220_s19, %s597_s8 }
  0x2e   : > { %p594_p4 = pnand %p592_p6, %p552_p2  ;;  %p600_p10 = scmp.lt.s32.totalorder %s598_s10, %s591_s0 }
  0x30   : > { %p595_p7 = pneg %p594_p4  ;;  %p601_p13 = por %p600_p10, %p599_p1 }
  0x32   : > { %p602_p3 = pnand %p601_p13, %p595_p7 }
  0x34   : > { %605 = shalt.err (!%p602_p3)
}
  0x35   : > { %490 = dma.hbm_to_vmem [thread:$0]  (!%p792_p0), %s217_s11, 32, %s220_s19, %s205_s21  }
  0x36   : > { %228 = sbr.rel (%p810_p5) target bundleno = 317 (0x13d), region = 32  ;;  %s826_s28 = sand.u32 (!%p810_p5), 1, %s674_s13  }
  0x37   : > { %s466_s22 = sshll.u32 (!%p810_p5), %s826_s28, 2  ;;  %s231_s23 = scalar_lea.sflag (!%p810_p5), [#allocation4], %s826_s28 }
  0x38   : > { %s234_s29 = scalar_lea.vmem (!%p810_p5), [#allocation3], %s466_s22 }
  0x3b   : > { %657 = dma.done.wait (%p765_p8), %s231_s23, 64  }
  0x3c   : > { %659 = vsyncadd (%p765_p8), %s231_s23, 4294967232  ;;  %s467_s0 = sshll.u32 %s826_s28, 1  ;;  %s240_s9 = scalar_lea.sflag [#allocation7], %s826_s28 }
  0x3d   : > { %s243_s30 = scalar_lea.vmem [#allocation6], %s467_s0 }
  0x3e   : > { %661 = dma.done.wait (%p765_p8), %s240_s9, 32  }
  0x3f   : > { %663 = vsyncadd (%p765_p8), %s240_s9, 4294967264  ;;  %v696_v0 = vmov 0.0   ;;  %v281_v1 = vld [vmem:[%s243_s30] sm:$0x3]  ;;  %v283_v2 = vld [vmem:[%s234_s29] sm:$0x3]  ;;  %v332_v29 = vlaneseq }
  0x40   : > { %280 = vst [vmem:[#allocation2] sm:$0x3] %v696_v0  ;;  %vm282_vm0 = vcmp.eq.s32.totalorder %v281_v1, 0  ;;  %vm293_vm1 = vcmp.eq.s32.totalorder %v281_v1, 1  ;;  %v469_v3 = vld [vmem:[%s234_s29 + $0x2] sm:$0x3] }
  0x41   : > { %v284_v4 = vsel %vm282_vm0, %v283_v2, 0.0  ;;  %v468_v7 = vld [vmem:[%s895_s2] ss:$0 sm:$0xff]  ;;  %v471_v9 = vld [vmem:[%s895_s2 + $0x1] ss:$0 sm:$0xff]  ;;  %vm321_vm2 = vcmask 1041408  }
  0x42   : > { %v296_v5 = vsel %vm293_vm1, %v469_v3, %v284_v4  ;;  %v292_v8 = vsel %vm282_vm0, %v468_v7, 0.0  ;;  %v333_v30 = vand.u32 127, %v332_v29  ;;  %s472_s24 = sshll.u32 %s682_s15, 4  ;;  %s269_s18 = scalar_lea.vmem [#allocation8], %s826_s28 }
  0x43   : > { %v306_v6 = vadd.f32 1e-06, %v296_v5  ;;  %v305_v12 = vsel %vm293_vm1, %v471_v9, %v292_v8  ;;  %s352_s19 = sshll.u32 %s269_s18, 4  ;;  %s851_s10 = scalar_lea.hbm %s896_s3, %s472_s24  ;;  %s353_s19 = int_to_ptr.vmem [resolvable:$true] %s352_s19 }
  0x44   : > { %vm334_vm3 = vcmp.eq.s32.totalorder %v333_v30, 0  ;;  %s339_s22 = scalar_lea.sflag [#allocation5], %s826_s28  ;;  %s606_s23 = scalar_lea.vmem %s353_s19, 16 }
  0x45   : > { %548 = vlog2.f32 %v306_v6  ;;  %v310_v10 = vsub.f32 1.0, %v306_v6  ;;  %p607_p8 = scmp.ne.s32.totalorder %s353_s19, %s606_s23  ;;  %s697_s15 = smov [#allocation8]  }
  0x46   : > { %s610_s29 = sshll.u32 %s697_s15, 4  ;;  %s611_s29 = int_to_ptr.vmem [resolvable:$false] %s610_s29 }
  0x47   : > { %v311_v14 = vmul.f32 %v310_v10, %v310_v10  ;;  %v314_v17 = vld [vmem:[#allocation2] sm:$0x3]  ;;  %p608_p0 = pnand %p607_p8, %p769_p9  ;;  %s612_s0 = scalar_lea.vmem %s611_s29, 32 }
  0x48   : > { %p613_p5 = scmp.lt.s32.totalorder %s353_s19, %s611_s29  ;;  %p614_p6 = scmp.lt.s32.totalorder %s612_s0, %s606_s23 }
  0x49   : > { %p609_p2 = pneg %p608_p0 }
  0x4a   : > { %p615_p4 = por %p614_p6, %p613_p5 }
  0x4c   : > { %p616_p7 = pnand %p615_p4, %p609_p2 }
  0x52   : > { %v549_v11 = vpop.eup %548 }
  0x53   : > { %v308_v13 = vmul.f32 0.6931472, %v549_v11 }
  0x55   : > { %v309_v15 = vmul.f32 %v308_v13, %v305_v12 }
  0x57   : > { %v312_v16 = vmul.f32 %v311_v14, %v309_v15 }
  0x59   : > { %v313_v18 = vsub.f32 0.0, %v312_v16 }
  0x5b   : > { %v315_v19 = vadd.f32 %v314_v17, %v313_v18 }
  0x5d   : > { %316 = vst [vmem:[#allocation2] sm:$0x3] %v315_v19 }
  0x64   : > { %v320_v20 = vld [vmem:[#allocation2] sm:$0x3] }
  0x65   : > { %v322_v21 = vsel %vm321_vm2, %v320_v20, 0.0 }
  0x66   : > { %323 = vadd.xlane.f32.xlu0 %v322_v21 }
  0xef   : > { %v324_v22 = vpop.xlane.xlu0 %323 }
  0xf0   : > { %v325_v23 = vrot.slane %v324_v22, 4 }
  0xf2   : > { %v326_v24 = vadd.f32 %v325_v23, %v324_v22 }
  0xf4   : > { %v327_v25 = vrot.slane %v326_v24, 2 }
  0xf6   : > { %v328_v26 = vadd.f32 %v327_v25, %v326_v24 }
  0xf8   : > { %v329_v27 = vrot.slane %v328_v26, 1 }
  0xfa   : > { %v330_v28 = vadd.f32 %v329_v27, %v328_v26 }
  0xfc   : > { %476 = vpush %v330_v28 }
 0x12d   : > { %s477_s21 = spop %476 }
 0x12e   : > { %v335_v31 = vstv %s477_s21 }
 0x12f   : > { %v336_v32 = vsel %vm334_vm3, %v335_v31, 0.0 }
 0x130   : > { %337 = vst [vmem:[%s269_s18] sm:$0x1] %v336_v32 }
 0x131   : > { %619 = shalt.err (!%p616_p7)
}
 0x132   : > { %s620_s9 = scalar_lea.hbm %s851_s10, 16  ;;  %s624_s4 = scalar_lea.hbm %s896_s3, 32 }
 0x133   : > { %p621_p1 = scmp.ne.s32.totalorder %s851_s10, %s620_s9  ;;  %p625_p3 = scmp.lt.s32.totalorder %s851_s10, %s896_s3 }
 0x134   : > { %p626_p8 = scmp.lt.s32.totalorder %s624_s4, %s620_s9 }
 0x135   : > { %p622_p10 = pnand %p621_p1, %p769_p9 }
 0x136   : > { %p627_p0 = por %p626_p8, %p625_p3 }
 0x137   : > { %p623_p13 = pneg %p622_p10 }
 0x139   : > { %p628_p2 = pnand %p627_p0, %p623_p13 }
 0x13b   : > { %631 = shalt.err (!%p628_p2)
}
 0x13c   : > { %482 = dma.vmem_to_hbm [thread:$0]  (%p769_p9), %s353_s19, 16, %s851_s10, %s339_s22  }
 0x13d PF: > { %s364_s11 = sand.u32 1, %s670_s12   ;;  %p492_p5 = pnand %p459_p12, %p776_p11 }
 0x13e   : > { %s365_s24 = scalar_lea.sflag [#allocation5], %s364_s11 }
 0x13f   : > { %p493_p6 = pneg %p492_p5 }
 0x141   : > { %665 = dma.done.wait (%p493_p6), %s365_s24, 16  }
 0x142   : > { %667 = vsyncadd (%p493_p6), %s365_s24, 4294967280  ;;  %s22_s17 = sadd.s32 1, %s690_s17   ;;  %s905_s12 = smov %s674_s13 }
 0x143   : > { %p19_p4 = scmp.ge.s32.totalorder %s22_s17, 4   ;;  %s906_s13 = smov %s678_s14 }
 0x144   : > { %s907_s14 = smov %s774_s26  ;;  %s908_s15 = smov %s686_s16 }
 0x145   : > { %s909_s16 = smov %s911_s20  ;;  %21 = sbr.rel (!%p19_p4) target bundleno = 10 (0xa), region = 100 }
 0x14a   :  { %369 = vsyncpa [#allocation4], 1 }
 0x14b   :  { %371 = vsyncpa [#allocation4 + $0x1], 1 }
 0x14c   :  { %372 = vsyncpa [#allocation7], 1 }
 0x14d   :  { %374 = vsyncpa [#allocation7 + $0x1], 1 }
 0x14e   :  { %375 = vsyncpa [#allocation5], 1 }
 0x14f   :  { %377 = vsyncpa [#allocation5 + $0x1], 1 }

</bundles_post_ra>
